<compile_context>
chip_gen: v5e
topology: v5e:2x2
jax: 0.10.0
libtpu: 0.0.40
codegen_flags: <defaults>
</compile_context>

<pallas_src>
import functools

import jax
import jax.numpy as jnp
import numpy as np
from jax.experimental import pallas as pl
from jax.experimental.pallas import tpu as pltpu

LANE = 128          # TPU lane width (last-dim tile)
SUBLANE_BF16 = 16   # bf16 sublane pack (second-to-last-dim tile)


# ----------------------------- Pallas kernel -------------------------------
def mlp_kernel(x_ref, w1_ref, b1_ref, w2_ref, b2_ref, w3_ref, b3_ref, o_ref):
    # fc1: bf16 MXU matmul, f32 accumulation; bf16 bias-add + ReLU epilogue.
    h1 = jnp.dot(x_ref[...], w1_ref[...], preferred_element_type=jnp.float32)
    h1 = jnp.maximum(h1.astype(jnp.bfloat16) + b1_ref[...], 0)
    # fc2
    h2 = jnp.dot(h1, w2_ref[...], preferred_element_type=jnp.float32)
    h2 = jnp.maximum(h2.astype(jnp.bfloat16) + b2_ref[...], 0)
    # fc3 (output columns pre-padded to a lane-dense multiple of 128), f32 out.
    o_ref[...] = (jnp.dot(h2, w3_ref[...], preferred_element_type=jnp.float32)
                  + b3_ref[...])


# ---------------------- one-time parameter preparation ----------------------
def prepare_params(params):
    """Convert f32 (PyTorch-layout) params into kernel-ready bf16 weights with
    fc3 columns zero-padded to a lane-dense multiple of 128.  Called once; the
    per-call forward never re-casts or re-pads weights."""
    out_size = params["w3"].shape[1]
    n_pad = max(LANE, ((out_size + LANE - 1) // LANE) * LANE)

    w3p = jnp.zeros((params["w3"].shape[0], n_pad), jnp.bfloat16)
    w3p = w3p.at[:, :out_size].set(params["w3"].astype(jnp.bfloat16))
    b3p = jnp.zeros((1, n_pad), jnp.float32)
    b3p = b3p.at[:, :out_size].set(params["b3"].astype(jnp.float32))

    return {
        "w1": params["w1"].astype(jnp.bfloat16),
        "b1": params["b1"].astype(jnp.bfloat16).reshape(1, -1),
        "w2": params["w2"].astype(jnp.bfloat16),
        "b2": params["b2"].astype(jnp.bfloat16).reshape(1, -1),
        "w3": w3p,
        "b3": b3p,
    }


# ------------------------------- forward ------------------------------------
@functools.partial(jax.jit, static_argnames=("output_shape",))
def multidim_net_forward(x, prepped, output_shape):
    """x: (B, C, H, W) float32. Returns (B,) + output_shape, float32."""
    B = x.shape[0]
    out_size = int(np.prod(output_shape))

    w1, b1 = prepped["w1"], prepped["b1"]
    w2, b2 = prepped["w2"], prepped["b2"]
    w3, b3 = prepped["w3"], prepped["b3"]
    in_size = w1.shape[0]
    h1n, h2n = w1.shape[1], w2.shape[1]
    n_pad = w3.shape[1]

    # Rows: pad only to the bf16 sublane pack (B=2 -> 16 rows).  For large
    # batches use 256-row tiles so the grid has >=2 blocks and the "parallel"
    # axis can be sharded across TensorCores (v7x megacore).
    m_pad = ((max(B, 1) + SUBLANE_BF16 - 1) // SUBLANE_BF16) * SUBLANE_BF16
    if m_pad <= 256:
        tile_m = m_pad
    else:
        tile_m = 256
        m_pad = ((m_pad + tile_m - 1) // tile_m) * tile_m
    grid = (m_pad // tile_m,)

    # Single fused pad+cast of the activations (row-major, like x.view(B, -1)).
    x_flat = x.reshape(B, -1).astype(jnp.bfloat16)
    x_pad = jnp.pad(x_flat, ((0, m_pad - B), (0, 0)))

    def weight_spec(shape):
        # Constant block index -> weights stay resident in VMEM across the grid.
        return pl.BlockSpec(shape, lambda i: (0, 0))

    # Cost estimate from the *real* padded row count (not an inflated tile).
    flops = 2 * m_pad * (in_size * h1n + h1n * h2n + h2n * n_pad)
    bytes_accessed = (x_pad.size * 2 + w1.size * 2 + w2.size * 2 + w3.size * 2
                      + (b1.size + b2.size) * 2 + b3.size * 4
                      + m_pad * n_pad * 4)

    out = pl.pallas_call(
        mlp_kernel,
        out_shape=jax.ShapeDtypeStruct((m_pad, n_pad), jnp.float32),
        grid=grid,
        in_specs=[
            pl.BlockSpec((tile_m, in_size), lambda i: (i, 0)),   # x row tile
            weight_spec(w1.shape), weight_spec(b1.shape),        # fc1
            weight_spec(w2.shape), weight_spec(b2.shape),        # fc2
            weight_spec(w3.shape), weight_spec(b3.shape),        # fc3 (padded)
        ],
        out_specs=pl.BlockSpec((tile_m, n_pad), lambda i: (i, 0)),
        compiler_params=pltpu.CompilerParams(
            dimension_semantics=("parallel",)),
        cost_estimate=pl.CostEstimate(flops=flops, transcendentals=0,
                                      bytes_accessed=bytes_accessed),
    )(x_pad, w1, b1, w2, b2, w3, b3)

    # Padded rows/columns carry garbage/zeros; slice them away before reshape.
    return out[:B, :out_size].reshape((-1,) + output_shape)


# ------------------------ deterministic param init -------------------------
def init_params(key, input_size, output_size):
    # PyTorch nn.Linear default: U(-1/sqrt(fan_in), 1/sqrt(fan_in)).
    def linear(key, fan_in, fan_out):
        kw, kb = jax.random.split(key)
        bound = 1.0 / np.sqrt(fan_in)
        # Stored as (in, out) so the kernel computes x @ W + b.
        w = jax.random.uniform(kw, (fan_in, fan_out), jnp.float32, -bound, bound)
        b = jax.random.uniform(kb, (1, fan_out), jnp.float32, -bound, bound)
        return w, b

    k1, k2, k3 = jax.random.split(key, 3)
    w1, b1 = linear(k1, input_size, 256)
    w2, b2 = linear(k2, 256, 128)
    w3, b3 = linear(k3, 128, output_size)
    return {"w1": w1, "b1": b1, "w2": w2, "b2": b2, "w3": w3, "b3": b3}


# --------------------------------- main -------------------------------------
if __name__ == "__main__":
    # input_schema dims: (C=4, H=16, W=16)  -> input_size  = 1024
    # output_schema dims: (4, 8)            -> output_size = 32
    input_schema_shape = (4, 16, 16)
    output_schema_shape = (4, 8)
    batch = 2

    input_size = int(np.prod(input_schema_shape))
    output_size = int(np.prod(output_schema_shape))

    key = jax.random.PRNGKey(0)
    kx, kp = jax.random.split(key)

    x = jax.random.normal(kx, (batch,) + input_schema_shape, jnp.float32)
    params = init_params(kp, input_size, output_size)

    # One-time weight prep (cast + lane-pad); off the per-call hot path.
    prepped = jax.block_until_ready(prepare_params(params))

    out = multidim_net_forward(x, prepped, output_schema_shape)
    out = jax.block_until_ready(out)

    assert out.shape == (batch,) + output_schema_shape, out.shape

    # Reference check in plain f32 JAX (bf16 weights/activations in the kernel,
    # f32 accumulation -> loosened tolerance).
    xf = x.reshape(batch, -1)
    h1 = jnp.maximum(xf @ params["w1"] + params["b1"], 0.0)
    h2 = jnp.maximum(h1 @ params["w2"] + params["b2"], 0.0)
    ref = (h2 @ params["w3"] + params["b3"]).reshape((-1,) + output_schema_shape)
    np.testing.assert_allclose(np.asarray(out), np.asarray(ref), rtol=2e-2, atol=2e-2)

    print("KERNEL_OK")
</pallas_src>

<mosaic_0001>
module attributes {stable_mosaic.version = 11 : i64} {
  func.func @mlp_kernel(%arg0: i32, %arg1: memref<16x1024xbf16, #tpu.memory_space<vmem>>, %arg2: memref<1024x256xbf16, #tpu.memory_space<vmem>>, %arg3: memref<1x256xbf16, #tpu.memory_space<vmem>>, %arg4: memref<256x128xbf16, #tpu.memory_space<vmem>>, %arg5: memref<1x128xbf16, #tpu.memory_space<vmem>>, %arg6: memref<128x128xbf16, #tpu.memory_space<vmem>>, %arg7: memref<1x128xf32, #tpu.memory_space<vmem>>, %arg8: memref<16x128xf32, #tpu.memory_space<vmem>>) attributes {dimension_semantics = [#tpu.dimension_semantics<parallel>], iteration_bounds = array<i64: 1>, scalar_prefetch = 0 : i64, scratch_operands = 0 : i64, tpu.core_type = #tpu.core_type<tc>, window_params = [{transform_indices = @transform_0, window_bounds = array<i64: 16, 1024>}, {pipeline_mode = #tpu.pipeline_mode<synchronous>, transform_indices = @transform_1, window_bounds = array<i64: 1024, 256>}, {pipeline_mode = #tpu.pipeline_mode<synchronous>, transform_indices = @transform_2, window_bounds = array<i64: 1, 256>}, {pipeline_mode = #tpu.pipeline_mode<synchronous>, transform_indices = @transform_3, window_bounds = array<i64: 256, 128>}, {pipeline_mode = #tpu.pipeline_mode<synchronous>, transform_indices = @transform_4, window_bounds = array<i64: 1, 128>}, {pipeline_mode = #tpu.pipeline_mode<synchronous>, transform_indices = @transform_5, window_bounds = array<i64: 128, 128>}, {pipeline_mode = #tpu.pipeline_mode<synchronous>, transform_indices = @transform_6, window_bounds = array<i64: 1, 128>}, {transform_indices = @transform_7, window_bounds = array<i64: 16, 128>}]} {
    %c0 = arith.constant 0 : index
    %c0_0 = arith.constant 0 : index
    %0 = vector.load %arg1[%c0, %c0_0] : memref<16x1024xbf16, #tpu.memory_space<vmem>>, vector<16x1024xbf16>
    %c0_1 = arith.constant 0 : index
    %c0_2 = arith.constant 0 : index
    %1 = vector.load %arg2[%c0_1, %c0_2] : memref<1024x256xbf16, #tpu.memory_space<vmem>>, vector<1024x256xbf16>
    %cst = arith.constant dense<0.000000e+00> : vector<16x256xf32>
    %2 = tpu.matmul %0, %1, %cst {dimension_numbers = #tpu.dot_dimension_numbers<[1], [0], [0], [1], [0, 0, 1, 1], [], []>} : vector<16x1024xbf16>, vector<1024x256xbf16>, vector<16x256xf32> -> vector<16x256xf32>
    %3 = arith.truncf %2 : vector<16x256xf32> to vector<16x256xbf16>
    %c0_3 = arith.constant 0 : index
    %c0_4 = arith.constant 0 : index
    %4 = vector.load %arg3[%c0_3, %c0_4] : memref<1x256xbf16, #tpu.memory_space<vmem>>, vector<1x256xbf16>
    %5 = vector.broadcast %4 : vector<1x256xbf16> to vector<16x256xbf16>
    %6 = arith.addf %3, %5 : vector<16x256xbf16>
    %cst_5 = arith.constant 0.000000e+00 : bf16
    %7 = vector.broadcast %cst_5 : bf16 to vector<16x256xbf16>
    %8 = arith.maximumf %6, %7 : vector<16x256xbf16>
    %c0_6 = arith.constant 0 : index
    %c0_7 = arith.constant 0 : index
    %9 = vector.load %arg4[%c0_6, %c0_7] : memref<256x128xbf16, #tpu.memory_space<vmem>>, vector<256x128xbf16>
    %cst_8 = arith.constant dense<0.000000e+00> : vector<16x128xf32>
    %10 = tpu.matmul %8, %9, %cst_8 {dimension_numbers = #tpu.dot_dimension_numbers<[1], [0], [0], [1], [0, 0, 1, 1], [], []>} : vector<16x256xbf16>, vector<256x128xbf16>, vector<16x128xf32> -> vector<16x128xf32>
    %11 = arith.truncf %10 : vector<16x128xf32> to vector<16x128xbf16>
    %c0_9 = arith.constant 0 : index
    %c0_10 = arith.constant 0 : index
    %12 = vector.load %arg5[%c0_9, %c0_10] : memref<1x128xbf16, #tpu.memory_space<vmem>>, vector<1x128xbf16>
    %13 = vector.broadcast %12 : vector<1x128xbf16> to vector<16x128xbf16>
    %14 = arith.addf %11, %13 : vector<16x128xbf16>
    %cst_11 = arith.constant 0.000000e+00 : bf16
    %15 = vector.broadcast %cst_11 : bf16 to vector<16x128xbf16>
    %16 = arith.maximumf %14, %15 : vector<16x128xbf16>
    %c0_12 = arith.constant 0 : index
    %c0_13 = arith.constant 0 : index
    %17 = vector.load %arg6[%c0_12, %c0_13] : memref<128x128xbf16, #tpu.memory_space<vmem>>, vector<128x128xbf16>
    %cst_14 = arith.constant dense<0.000000e+00> : vector<16x128xf32>
    %18 = tpu.matmul %16, %17, %cst_14 {dimension_numbers = #tpu.dot_dimension_numbers<[1], [0], [0], [1], [0, 0, 1, 1], [], []>} : vector<16x128xbf16>, vector<128x128xbf16>, vector<16x128xf32> -> vector<16x128xf32>
    %c0_15 = arith.constant 0 : index
    %c0_16 = arith.constant 0 : index
    %19 = vector.load %arg7[%c0_15, %c0_16] : memref<1x128xf32, #tpu.memory_space<vmem>>, vector<1x128xf32>
    %20 = vector.broadcast %19 : vector<1x128xf32> to vector<16x128xf32>
    %21 = arith.addf %18, %20 : vector<16x128xf32>
    %c0_17 = arith.constant 0 : index
    %c0_18 = arith.constant 0 : index
    %22 = vector.load %arg8[%c0_17, %c0_18] : memref<16x128xf32, #tpu.memory_space<vmem>>, vector<16x128xf32>
    tpu.vector_store %arg8[%c0_17, %c0_18], %21 {strides = array<i32>} : memref<16x128xf32, #tpu.memory_space<vmem>>, vector<16x128xf32>,
    return
  }
  func.func @transform_0(%arg0: i32) -> (i32, i32) {
    %c0_i32 = arith.constant 0 : i32
    %c0_i32_0 = arith.constant 0 : i32
    return %arg0, %c0_i32 : i32, i32
  }
  func.func @transform_1(%arg0: i32) -> (i32, i32) {
    %c0_i32 = arith.constant 0 : i32
    %c0_i32_0 = arith.constant 0 : i32
    %c0_i32_1 = arith.constant 0 : i32
    return %c0_i32, %c0_i32_0 : i32, i32
  }
  func.func @transform_2(%arg0: i32) -> (i32, i32) {
    %c0_i32 = arith.constant 0 : i32
    %c0_i32_0 = arith.constant 0 : i32
    %c0_i32_1 = arith.constant 0 : i32
    return %c0_i32, %c0_i32_0 : i32, i32
  }
  func.func @transform_3(%arg0: i32) -> (i32, i32) {
    %c0_i32 = arith.constant 0 : i32
    %c0_i32_0 = arith.constant 0 : i32
    %c0_i32_1 = arith.constant 0 : i32
    return %c0_i32, %c0_i32_0 : i32, i32
  }
  func.func @transform_4(%arg0: i32) -> (i32, i32) {
    %c0_i32 = arith.constant 0 : i32
    %c0_i32_0 = arith.constant 0 : i32
    %c0_i32_1 = arith.constant 0 : i32
    return %c0_i32, %c0_i32_0 : i32, i32
  }
  func.func @transform_5(%arg0: i32) -> (i32, i32) {
    %c0_i32 = arith.constant 0 : i32
    %c0_i32_0 = arith.constant 0 : i32
    %c0_i32_1 = arith.constant 0 : i32
    return %c0_i32, %c0_i32_0 : i32, i32
  }
  func.func @transform_6(%arg0: i32) -> (i32, i32) {
    %c0_i32 = arith.constant 0 : i32
    %c0_i32_0 = arith.constant 0 : i32
    %c0_i32_1 = arith.constant 0 : i32
    return %c0_i32, %c0_i32_0 : i32, i32
  }
  func.func @transform_7(%arg0: i32) -> (i32, i32) {
    %c0_i32 = arith.constant 0 : i32
    %c0_i32_0 = arith.constant 0 : i32
    return %arg0, %c0_i32 : i32, i32
  }
}

</mosaic_0001>

<bundles_post_ra>
// kernel: multidim_net_forward.1
= control target key start
LH: loop header
LB: loop body
LE: loop exit
PB: predicated region body
PF: predicated region fallthrough
CT: control target
= control target key end

     0   :  { %12 = vsyncpa [#allocation3], 0  ;;  %s2211_s27 = smov [#allocation2]   ;;  %s2212_s29 = smov 128   ;;  %s2442_s0 = inlined_call_operand.vmem [shape: bf16[16,1024], index: 0, kind: input, shape index: {}]   ;;  %s2443_s1 = inlined_call_operand.hbm [shape: bf16[1024,256], index: 1, kind: input, shape index: {}]   ;;  %s2444_s2 = inlined_call_operand.vmem [shape: bf16[1,256], index: 2, kind: input, shape index: {}]   ;;  %s2445_s3 = inlined_call_operand.vmem [shape: bf16[256,128], index: 3, kind: input, shape index: {}]   ;;  %s2446_s4 = inlined_call_operand.vmem [shape: bf16[1,128], index: 4, kind: input, shape index: {}]   ;;  %s2447_s5 = inlined_call_operand.vmem [shape: bf16[128,128], index: 5, kind: input, shape index: {}]   ;;  %s2448_s6 = inlined_call_operand.vmem [shape: f32[1,128], index: 6, kind: input, shape index: {}]   ;;  %s2449_s7 = inlined_call_operand.vmem [shape: f32[16,128], index: 7, kind: output, shape index: {}]  }
   0x1   :  { %s19_s26 = sshll.u32 %s2443_s1, 4  ;;  %s21_s28 = sshll.u32 %s2211_s27, 4  ;;  %s20_s26 = int_to_ptr.hbm [resolvable:$true] %s19_s26  ;;  %s22_s28 = int_to_ptr.vmem [resolvable:$true] %s21_s28 }
   0x2   :  { %s2213_s30 = smov 8  }
   0x3   :  { %27 = dma.hbm_to_vmem [thread:$0]  %s20_s26, 16384, %s22_s28, [#allocation3], %s2212_s29, %s2212_s29, %s2213_s30  }
   0x4   :  { %2209 = dma.done.wait [#allocation3], 16384  }
   0x5   :  { %2210 = vsyncadd [#allocation3], 4294950912  ;;  %v1471_v0 = vld [vmem:[#allocation2 + $0x70] sm:$0xf]  ;;  %v2044_v1 = vld [vmem:[#allocation2 + $0x74] sm:$0xf0] }
   0x6   :  { %v1535_v2 = vld [vmem:[#allocation2 + $0xf0] sm:$0xf]  ;;  %v1472_v3 = vor.u32 %v2044_v1, %v1471_v0  ;;  %v2060_v4 = vld [vmem:[#allocation2 + $0xf4] sm:$0xf0]  ;;  %v1463_v11 = vld [vmem:[#allocation2 + $0x60] sm:$0xf] }
   0x7   :  { %v1599_v5 = vld [vmem:[#allocation2 + $0x170] sm:$0xf]  ;;  %v2076_v6 = vld [vmem:[#allocation2 + $0x174] sm:$0xf0]  ;;  %v1536_v7 = vor.u32 %v2060_v4, %v1535_v2  ;;  %v2042_v13 = vld [vmem:[#allocation2 + $0x64] sm:$0xf0] }
   0x8   :  { %v1600_v8 = vor.u32 %v2076_v6, %v1599_v5  ;;  %v1663_v9 = vld [vmem:[#allocation2 + $0x1f0] sm:$0xf]  ;;  %v2092_v10 = vld [vmem:[#allocation2 + $0x1f4] sm:$0xf0]  ;;  %858 = vmatpush.bf16.msra.mxu0 %v1472_v3  ;;  %v1527_v14 = vld [vmem:[#allocation2 + $0xe0] sm:$0xf]  ;;  %v1464_v16 = vor.u32 %v2042_v13, %v1463_v11 }
   0x9   :  { %v1664_v12 = vor.u32 %v2092_v10, %v1663_v9  ;;  %v2058_v15 = vld [vmem:[#allocation2 + $0xe4] sm:$0xf0]  ;;  %872 = vmatpush.bf16.msra.mxu1 %v1536_v7  ;;  %v1591_v18 = vld [vmem:[#allocation2 + $0x160] sm:$0xf]  ;;  %v1455_v23 = vld [vmem:[#allocation2 + $0x50] sm:$0xf] }
   0xa   :  { %886 = vmatpush.bf16.msra.mxu2 %v1600_v8  ;;  %v1528_v17 = vor.u32 %v2058_v15, %v1527_v14  ;;  %v2074_v19 = vld [vmem:[#allocation2 + $0x164] sm:$0xf0]  ;;  %v1655_v20 = vld [vmem:[#allocation2 + $0x1e0] sm:$0xf]  ;;  %v2040_v24 = vld [vmem:[#allocation2 + $0x54] sm:$0xf0] }
   0xb   :  { %900 = vmatpush.bf16.msra.mxu3 %v1664_v12  ;;  %v1592_v21 = vor.u32 %v2074_v19, %v1591_v18  ;;  %v2090_v22 = vld [vmem:[#allocation2 + $0x1e4] sm:$0xf0]  ;;  %v1519_v26 = vld [vmem:[#allocation2 + $0xd0] sm:$0xf]  ;;  %v2056_v27 = vld [vmem:[#allocation2 + $0xd4] sm:$0xf0]  ;;  %v1456_v29 = vor.u32 %v2040_v24, %v1455_v23 }
   0xc   :  { %v1656_v25 = vor.u32 %v2090_v22, %v1655_v20  ;;  %v1583_v28 = vld [vmem:[#allocation2 + $0x150] sm:$0xf]  ;;  %859 = vmatpush.bf16.msra.mxu0 %v1464_v16  ;;  %v2072_v30 = vld [vmem:[#allocation2 + $0x154] sm:$0xf0]  ;;  %v1520_v33 = vor.u32 %v2056_v27, %v1519_v26  ;;  %v1447_v35 = vld [vmem:[#allocation2 + $0x40] sm:$0xf] }
   0xd   :  { %v1647_v31 = vld [vmem:[#allocation2 + $0x1d0] sm:$0xf]  ;;  %v2088_v32 = vld [vmem:[#allocation2 + $0x1d4] sm:$0xf0]  ;;  %873 = vmatpush.bf16.msra.mxu1 %v1528_v17  ;;  %v1584_v34 = vor.u32 %v2072_v30, %v1583_v28  ;;  %v2038_v36 = vld [vmem:[#allocation2 + $0x44] sm:$0xf0] }
   0xe   :  { %887 = vmatpush.bf16.msra.mxu2 %v1592_v21  ;;  %v1511_v37 = vld [vmem:[#allocation2 + $0xc0] sm:$0xf]  ;;  %v1648_v38 = vor.u32 %v2088_v32, %v1647_v31  ;;  %v2054_v39 = vld [vmem:[#allocation2 + $0xc4] sm:$0xf0]  ;;  %v1448_v44 = vor.u32 %v2038_v36, %v1447_v35  ;;  %v1439_v47 = vld [vmem:[#allocation2 + $0x30] sm:$0xf] }
   0xf   :  { %901 = vmatpush.bf16.msra.mxu3 %v1656_v25  ;;  %v1575_v40 = vld [vmem:[#allocation2 + $0x140] sm:$0xf]  ;;  %v2070_v41 = vld [vmem:[#allocation2 + $0x144] sm:$0xf0]  ;;  %v1512_v45 = vor.u32 %v2054_v39, %v1511_v37  ;;  %v2036_v48 = vld [vmem:[#allocation2 + $0x34] sm:$0xf0] }
  0x10   :  { %v1639_v42 = vld [vmem:[#allocation2 + $0x1c0] sm:$0xf]  ;;  %v2086_v43 = vld [vmem:[#allocation2 + $0x1c4] sm:$0xf0]  ;;  %860 = vmatpush.bf16.msra.mxu0 %v1456_v29  ;;  %v1576_v46 = vor.u32 %v2070_v41, %v1575_v40  ;;  %v1503_v49 = vld [vmem:[#allocation2 + $0xb0] sm:$0xf]  ;;  %v1440_v56 = vor.u32 %v2036_v48, %v1439_v47 }
  0x11   :  { %874 = vmatpush.bf16.msra.mxu1 %v1520_v33  ;;  %v1640_v50 = vor.u32 %v2086_v43, %v1639_v42  ;;  %v2052_v51 = vld [vmem:[#allocation2 + $0xb4] sm:$0xf0]  ;;  %v1567_v52 = vld [vmem:[#allocation2 + $0x130] sm:$0xf]  ;;  %v1431_v59 = vld [vmem:[#allocation2 + $0x20] sm:$0xf] }
  0x12   :  { %888 = vmatpush.bf16.msra.mxu2 %v1584_v34  ;;  %v2068_v53 = vld [vmem:[#allocation2 + $0x134] sm:$0xf0]  ;;  %v1631_v54 = vld [vmem:[#allocation2 + $0x1b0] sm:$0xf]  ;;  %v1504_v57 = vor.u32 %v2052_v51, %v1503_v49  ;;  %v2034_v60 = vld [vmem:[#allocation2 + $0x24] sm:$0xf0] }
  0x13   :  { %902 = vmatpush.bf16.msra.mxu3 %v1648_v38  ;;  %v2084_v55 = vld [vmem:[#allocation2 + $0x1b4] sm:$0xf0]  ;;  %v1568_v58 = vor.u32 %v2068_v53, %v1567_v52  ;;  %v1495_v61 = vld [vmem:[#allocation2 + $0xa0] sm:$0xf]  ;;  %v2050_v63 = vld [vmem:[#allocation2 + $0xa4] sm:$0xf0]  ;;  %v1432_v4 = vor.u32 %v2034_v60, %v1431_v59 }
  0x14   :  { %861 = vmatpush.bf16.msra.mxu0 %v1448_v44  ;;  %v1632_v62 = vor.u32 %v2084_v55, %v1631_v54  ;;  %v1559_v0 = vld [vmem:[#allocation2 + $0x120] sm:$0xf]  ;;  %v2066_v1 = vld [vmem:[#allocation2 + $0x124] sm:$0xf0]  ;;  %v1496_v5 = vor.u32 %v2050_v63, %v1495_v61  ;;  %v1423_v7 = vld [vmem:[#allocation2 + $0x10] sm:$0xf] }
  0x15   :  { %875 = vmatpush.bf16.msra.mxu1 %v1512_v45  ;;  %v1623_v2 = vld [vmem:[#allocation2 + $0x1a0] sm:$0xf]  ;;  %v2082_v3 = vld [vmem:[#allocation2 + $0x1a4] sm:$0xf0]  ;;  %v1560_v6 = vor.u32 %v2066_v1, %v1559_v0  ;;  %v2032_v8 = vld [vmem:[#allocation2 + $0x14] sm:$0xf0] }
  0x16   :  { %889 = vmatpush.bf16.msra.mxu2 %v1576_v46  ;;  %v1487_v9 = vld [vmem:[#allocation2 + $0x90] sm:$0xf]  ;;  %v1624_v10 = vor.u32 %v2082_v3, %v1623_v2  ;;  %v2048_v11 = vld [vmem:[#allocation2 + $0x94] sm:$0xf0]  ;;  %v1424_v16 = vor.u32 %v2032_v8, %v1423_v7  ;;  %v1415_v17 = vld [vmem:[#allocation2] sm:$0xf] }
  0x17   :  { %903 = vmatpush.bf16.msra.mxu3 %v1640_v50  ;;  %v1551_v12 = vld [vmem:[#allocation2 + $0x110] sm:$0xf]  ;;  %v2064_v13 = vld [vmem:[#allocation2 + $0x114] sm:$0xf0]  ;;  %v2030_v18 = vld [vmem:[#allocation2 + $0x4] sm:$0xf0]  ;;  %v1488_v19 = vor.u32 %v2048_v11, %v1487_v9 }
  0x18   :  { %862 = vmatpush.bf16.msra.mxu0 %v1440_v56  ;;  %v1615_v14 = vld [vmem:[#allocation2 + $0x190] sm:$0xf]  ;;  %v2080_v15 = vld [vmem:[#allocation2 + $0x194] sm:$0xf0]  ;;  %v1552_v20 = vor.u32 %v2064_v13, %v1551_v12  ;;  %v1479_v21 = vld [vmem:[#allocation2 + $0x80] sm:$0xf]  ;;  %v1416_v31 = vor.u32 %v2030_v18, %v1415_v17 }
  0x19   :  { %876 = vmatpush.bf16.msra.mxu1 %v1504_v57  ;;  %v2046_v22 = vld [vmem:[#allocation2 + $0x84] sm:$0xf0]  ;;  %v1543_v23 = vld [vmem:[#allocation2 + $0x100] sm:$0xf]  ;;  %v1616_v24 = vor.u32 %v2080_v15, %v1615_v14  ;;  %v1727_v28 = vld [vmem:[#allocation2 + $0x270] sm:$0xf] }
  0x1a   :  { %890 = vmatpush.bf16.msra.mxu2 %v1568_v58  ;;  %v2062_v25 = vld [vmem:[#allocation2 + $0x104] sm:$0xf0]  ;;  %v1607_v26 = vld [vmem:[#allocation2 + $0x180] sm:$0xf]  ;;  %v2108_v29 = vld [vmem:[#allocation2 + $0x274] sm:$0xf0]  ;;  %v1480_v35 = vor.u32 %v2046_v22, %v1479_v21 }
  0x1b   :  { %904 = vmatpush.bf16.msra.mxu3 %v1632_v62  ;;  %v2078_v27 = vld [vmem:[#allocation2 + $0x184] sm:$0xf0]  ;;  %v1791_v30 = vld [vmem:[#allocation2 + $0x2f0] sm:$0xf]  ;;  %v2124_v32 = vld [vmem:[#allocation2 + $0x2f4] sm:$0xf0]  ;;  %v1544_v36 = vor.u32 %v2062_v25, %v1543_v23  ;;  %v1728_v40 = vor.u32 %v2108_v29, %v1727_v28 }
  0x1c   :  { %863 = vmatpush.bf16.msra.mxu0 %v1432_v4  ;;  %v1855_v33 = vld [vmem:[#allocation2 + $0x370] sm:$0xf]  ;;  %v2140_v34 = vld [vmem:[#allocation2 + $0x374] sm:$0xf0]  ;;  %v1608_v39 = vor.u32 %v2078_v27, %v1607_v26  ;;  %v1719_v41 = vld [vmem:[#allocation2 + $0x260] sm:$0xf]  ;;  %v1792_v43 = vor.u32 %v2124_v32, %v1791_v30 }
  0x1d   :  { %877 = vmatpush.bf16.msra.mxu1 %v1496_v5  ;;  %v1919_v37 = vld [vmem:[#allocation2 + $0x3f0] sm:$0xf]  ;;  %v2156_v38 = vld [vmem:[#allocation2 + $0x3f4] sm:$0xf0]  ;;  %v2106_v42 = vld [vmem:[#allocation2 + $0x264] sm:$0xf0]  ;;  %v1856_v44 = vor.u32 %v2140_v34, %v1855_v33 }
  0x1e   :  { %891 = vmatpush.bf16.msra.mxu2 %v1560_v6  ;;  %v1783_v45 = vld [vmem:[#allocation2 + $0x2e0] sm:$0xf]  ;;  %v2122_v46 = vld [vmem:[#allocation2 + $0x2e4] sm:$0xf0]  ;;  %v1920_v48 = vor.u32 %v2156_v38, %v1919_v37  ;;  %v1383_v52 = vld [vmem:[%s2442_s0] sm:$0xf]  ;;  %v1720_v55 = vor.u32 %v2106_v42, %v1719_v41 }
  0x1f   :  { %905 = vmatpush.bf16.msra.mxu3 %v1624_v10  ;;  %v1847_v47 = vld [vmem:[#allocation2 + $0x360] sm:$0xf]  ;;  %v2138_v49 = vld [vmem:[#allocation2 + $0x364] sm:$0xf0]  ;;  %v2025_v53 = vld [vmem:[%s2442_s0 + $0x1c] sm:$0xf0]  ;;  %v1784_v60 = vor.u32 %v2122_v46, %v1783_v45 }
  0x20   :  { %864 = vmatpush.bf16.msra.mxu0 %v1424_v16  ;;  %v1911_v50 = vld [vmem:[#allocation2 + $0x3e0] sm:$0xf]  ;;  %v2154_v51 = vld [vmem:[#allocation2 + $0x3e4] sm:$0xf0]  ;;  %v1711_v56 = vld [vmem:[#allocation2 + $0x250] sm:$0xf]  ;;  %v2266_v58 = vor.u32 %v2025_v53, %v1383_v52  ;;  %v1848_v61 = vor.u32 %v2138_v49, %v1847_v47 }
  0x21   :  { %878 = vmatpush.bf16.msra.mxu1 %v1488_v19  ;;  %v1391_v54 = vld [vmem:[%s2442_s0 + $0x8] sm:$0xf]  ;;  %v2104_v57 = vld [vmem:[#allocation2 + $0x254] sm:$0xf0]  ;;  %v1775_v62 = vld [vmem:[#allocation2 + $0x2d0] sm:$0xf]  ;;  %v1912_v2 = vor.u32 %v2154_v51, %v1911_v50 }
  0x22   :  { %892 = vmatpush.bf16.msra.mxu2 %v1552_v20  ;;  %v2026_v59 = vld [vmem:[%s2442_s0 + $0x24] sm:$0xf0]  ;;  %v2120_v63 = vld [vmem:[#allocation2 + $0x2d4] sm:$0xf0]  ;;  %v1839_v0 = vld [vmem:[#allocation2 + $0x350] sm:$0xf]  ;;  %v1712_v9 = vor.u32 %v2104_v57, %v1711_v56 }
  0x23   :  { %906 = vmatpush.bf16.msra.mxu3 %v1616_v24  ;;  %v2271_v1 = vor.u32 %v2026_v59, %v1391_v54  ;;  %v2136_v3 = vld [vmem:[#allocation2 + $0x354] sm:$0xf0]  ;;  %v1903_v4 = vld [vmem:[#allocation2 + $0x3d0] sm:$0xf]  ;;  %v2021_v6 = vld [vmem:[%s2442_s0 + $0x4] sm:$0xf]  ;;  %v1776_v12 = vor.u32 %v2120_v63, %v1775_v62 }
  0x24   :  { %865 = vmatpush.bf16.msra.mxu0 %v1416_v31  ;;  %v2152_v5 = vld [vmem:[#allocation2 + $0x3d4] sm:$0xf0]  ;;  %v1385_v7 = vld [vmem:[%s2442_s0 + $0x20] sm:$0xf0]  ;;  %v2022_v8 = vld [vmem:[%s2442_s0 + $0xc] sm:$0xf]  ;;  %v1840_v13 = vor.u32 %v2136_v3, %v1839_v0 }
  0x25   :  { %879 = vmatpush.bf16.msra.mxu1 %v1480_v35  ;;  %v2284_v10 = vor.u32 %v2021_v6, %v1385_v7  ;;  %v1393_v11 = vld [vmem:[%s2442_s0 + $0x28] sm:$0xf0]  ;;  %v1703_v14 = vld [vmem:[#allocation2 + $0x240] sm:$0xf]  ;;  %v2102_v15 = vld [vmem:[#allocation2 + $0x244] sm:$0xf0]  ;;  %v1904_v18 = vor.u32 %v2152_v5, %v1903_v4 }
  0x26   :  { %893 = vmatpush.bf16.msra.mxu2 %v1544_v36  ;;  %v1767_v16 = vld [vmem:[#allocation2 + $0x2c0] sm:$0xf]  ;;  %v2289_v17 = vor.u32 %v2022_v8, %v1393_v11  ;;  %v2118_v19 = vld [vmem:[#allocation2 + $0x2c4] sm:$0xf0]  ;;  %v1704_v24 = vor.u32 %v2102_v15, %v1703_v14  ;;  %v1695_v27 = vld [vmem:[#allocation2 + $0x230] sm:$0xf] }
  0x27   :  { %907 = vmatpush.bf16.msra.mxu3 %v1608_v39  ;;  %866 = vmatmul.bf16.vlgmr.msra.gmra.mxu0 %v2266_v58  ;;  %v1831_v20 = vld [vmem:[#allocation2 + $0x340] sm:$0xf]  ;;  %v2134_v21 = vld [vmem:[#allocation2 + $0x344] sm:$0xf0]  ;;  %v1768_v25 = vor.u32 %v2118_v19, %v1767_v16  ;;  %v2100_v28 = vld [vmem:[#allocation2 + $0x234] sm:$0xf0] }
  0x28   :  { %914 = vmatpush.bf16.msrb.mxu0 %v1728_v40  ;;  %880 = vmatmul.bf16.vlgmr.msra.gmra.mxu1 %v2284_v10  ;;  %v1895_v22 = vld [vmem:[#allocation2 + $0x3c0] sm:$0xf]  ;;  %v2150_v23 = vld [vmem:[#allocation2 + $0x3c4] sm:$0xf0]  ;;  %v1832_v26 = vor.u32 %v2134_v21, %v1831_v20  ;;  %v1759_v29 = vld [vmem:[#allocation2 + $0x2b0] sm:$0xf]  ;;  %v1696_v36 = vor.u32 %v2100_v28, %v1695_v27 }
  0x29   :  { %928 = vmatpush.bf16.msrb.mxu1 %v1792_v43  ;;  %894 = vmatmul.bf16.vlgmr.msra.gmra.mxu2 %v2271_v1  ;;  %v1896_v30 = vor.u32 %v2150_v23, %v1895_v22  ;;  %v2116_v31 = vld [vmem:[#allocation2 + $0x2b4] sm:$0xf0]  ;;  %v1823_v32 = vld [vmem:[#allocation2 + $0x330] sm:$0xf]  ;;  %v1687_v39 = vld [vmem:[#allocation2 + $0x220] sm:$0xf] }
  0x2a   :  { %942 = vmatpush.bf16.msrb.mxu2 %v1856_v44  ;;  %908 = vmatmul.bf16.vlgmr.msra.gmra.mxu3 %v2289_v17  ;;  %v2132_v33 = vld [vmem:[#allocation2 + $0x334] sm:$0xf0]  ;;  %v1887_v34 = vld [vmem:[#allocation2 + $0x3b0] sm:$0xf]  ;;  %v1760_v37 = vor.u32 %v2116_v31, %v1759_v29  ;;  %v2098_v40 = vld [vmem:[#allocation2 + $0x224] sm:$0xf0] }
  0x2b   :  { %956 = vmatpush.bf16.msrb.mxu3 %v1920_v48  ;;  %v2148_v35 = vld [vmem:[#allocation2 + $0x3b4] sm:$0xf0]  ;;  %v1824_v38 = vor.u32 %v2132_v33, %v1823_v32  ;;  %v1751_v41 = vld [vmem:[#allocation2 + $0x2a0] sm:$0xf]  ;;  %v2114_v43 = vld [vmem:[#allocation2 + $0x2a4] sm:$0xf0]  ;;  %v1688_v48 = vor.u32 %v2098_v40, %v1687_v39 }
  0x2c   :  { %915 = vmatpush.bf16.msrb.mxu0 %v1720_v55  ;;  %v1888_v42 = vor.u32 %v2148_v35, %v1887_v34  ;;  %v1815_v44 = vld [vmem:[#allocation2 + $0x320] sm:$0xf]  ;;  %v2130_v45 = vld [vmem:[#allocation2 + $0x324] sm:$0xf0]  ;;  %v1679_v49 = vld [vmem:[#allocation2 + $0x210] sm:$0xf]  ;;  %v1752_v50 = vor.u32 %v2114_v43, %v1751_v41 }
  0x2d   :  { %929 = vmatpush.bf16.msrb.mxu1 %v1784_v60  ;;  %v1879_v46 = vld [vmem:[#allocation2 + $0x3a0] sm:$0xf]  ;;  %v2146_v47 = vld [vmem:[#allocation2 + $0x3a4] sm:$0xf0]  ;;  %v1816_v51 = vor.u32 %v2130_v45, %v1815_v44  ;;  %v2096_v52 = vld [vmem:[#allocation2 + $0x214] sm:$0xf0] }
  0x2e   :  { %943 = vmatpush.bf16.msrb.mxu2 %v1848_v61  ;;  %v1743_v53 = vld [vmem:[#allocation2 + $0x290] sm:$0xf]  ;;  %v2112_v54 = vld [vmem:[#allocation2 + $0x294] sm:$0xf0]  ;;  %v1880_v55 = vor.u32 %v2146_v47, %v1879_v46  ;;  %v1671_v61 = vld [vmem:[#allocation2 + $0x200] sm:$0xf]  ;;  %v1680_v63 = vor.u32 %v2096_v52, %v1679_v49 }
  0x2f   :  { %957 = vmatpush.bf16.msrb.mxu3 %v1912_v2  ;;  %v1807_v56 = vld [vmem:[#allocation2 + $0x310] sm:$0xf]  ;;  %v2128_v57 = vld [vmem:[#allocation2 + $0x314] sm:$0xf0]  ;;  %v2094_v62 = vld [vmem:[#allocation2 + $0x204] sm:$0xf0]  ;;  %v1744_v5 = vor.u32 %v2112_v54, %v1743_v53 }
  0x30   :  { %916 = vmatpush.bf16.msrb.mxu0 %v1712_v9  ;;  %v1871_v59 = vld [vmem:[#allocation2 + $0x390] sm:$0xf]  ;;  %v2144_v60 = vld [vmem:[#allocation2 + $0x394] sm:$0xf0]  ;;  %v1735_v0 = vld [vmem:[#allocation2 + $0x280] sm:$0xf]  ;;  %v1808_v6 = vor.u32 %v2128_v57, %v1807_v56  ;;  %v1672_v19 = vor.u32 %v2094_v62, %v1671_v61 }
  0x31   :  { %930 = vmatpush.bf16.msrb.mxu1 %v1776_v12  ;;  %v2110_v2 = vld [vmem:[#allocation2 + $0x284] sm:$0xf0]  ;;  %v1799_v3 = vld [vmem:[#allocation2 + $0x300] sm:$0xf]  ;;  %v2043_v9 = vld [vmem:[#allocation2 + $0x74] sm:$0xf]  ;;  %v1872_v11 = vor.u32 %v2144_v60, %v1871_v59 }
  0x32   :  { %944 = vmatpush.bf16.msrb.mxu2 %v1840_v13  ;;  %v2126_v4 = vld [vmem:[#allocation2 + $0x304] sm:$0xf0]  ;;  %v1863_v7 = vld [vmem:[#allocation2 + $0x380] sm:$0xf]  ;;  %v1473_v12 = vld [vmem:[#allocation2 + $0x78] sm:$0xf0]  ;;  %v1736_v23 = vor.u32 %v2110_v2, %v1735_v0 }
  0x33   :  { %958 = vmatpush.bf16.msrb.mxu3 %v1904_v18  ;;  %v2142_v8 = vld [vmem:[#allocation2 + $0x384] sm:$0xf0]  ;;  %v2059_v13 = vld [vmem:[#allocation2 + $0xf4] sm:$0xf]  ;;  %v1537_v14 = vld [vmem:[#allocation2 + $0xf8] sm:$0xf0]  ;;  %v1476_v29 = vor.u32 %v2043_v9, %v1473_v12 }
  0x34   :  { %917 = vmatpush.bf16.msrb.mxu0 %v1704_v24  ;;  %v2075_v15 = vld [vmem:[#allocation2 + $0x174] sm:$0xf]  ;;  %v1601_v16 = vld [vmem:[#allocation2 + $0x178] sm:$0xf0]  ;;  %v1399_v21 = vld [vmem:[%s2442_s0 + $0x10] sm:$0xf]  ;;  %v1800_v24 = vor.u32 %v2126_v4, %v1799_v3  ;;  %v1864_v28 = vor.u32 %v2142_v8, %v1863_v7  ;;  %v1540_v33 = vor.u32 %v2059_v13, %v1537_v14 }
  0x35   :  { %931 = vmatpush.bf16.msrb.mxu1 %v1768_v25  ;;  %v2091_v18 = vld [vmem:[#allocation2 + $0x1f4] sm:$0xf]  ;;  %v1665_v20 = vld [vmem:[#allocation2 + $0x1f8] sm:$0xf0]  ;;  %v2027_v22 = vld [vmem:[%s2442_s0 + $0x2c] sm:$0xf0]  ;;  %v1604_v34 = vor.u32 %v2075_v15, %v1601_v16 }
  0x36   :  { %945 = vmatpush.bf16.msrb.mxu2 %v1832_v26  ;;  %v1407_v25 = vld [vmem:[%s2442_s0 + $0x18] sm:$0xf]  ;;  %v2023_v27 = vld [vmem:[%s2442_s0 + $0x14] sm:$0xf]  ;;  %v2024_v31 = vld [vmem:[%s2442_s0 + $0x1c] sm:$0xf]  ;;  %v2317_v39 = vor.u32 %v2027_v22, %v1399_v21 }
  0x37   :  { %959 = vmatpush.bf16.msrb.mxu3 %v1896_v30  ;;  %v2028_v26 = vld [vmem:[%s2442_s0 + $0x34] sm:$0xf0]  ;;  %v1401_v30 = vld [vmem:[%s2442_s0 + $0x30] sm:$0xf0]  ;;  %v1409_v32 = vld [vmem:[%s2442_s0 + $0x38] sm:$0xf0] }
  0x38   :  { %918 = vmatpush.bf16.msrb.mxu0 %v1696_v36  ;;  %v2041_v35 = vld [vmem:[#allocation2 + $0x64] sm:$0xf]  ;;  %v1465_v36 = vld [vmem:[#allocation2 + $0x68] sm:$0xf0]  ;;  %v2319_v43 = vor.u32 %v2028_v26, %v1407_v25  ;;  %v2321_v44 = vor.u32 %v2023_v27, %v1401_v30  ;;  %v2323_v47 = vor.u32 %v2024_v31, %v1409_v32  ;;  %v1457_v52 = vld [vmem:[#allocation2 + $0x58] sm:$0xf0] }
  0x39   :  { %932 = vmatpush.bf16.msrb.mxu1 %v1760_v37  ;;  %v2057_v37 = vld [vmem:[#allocation2 + $0xe4] sm:$0xf]  ;;  %v1529_v40 = vld [vmem:[#allocation2 + $0xe8] sm:$0xf0]  ;;  %v2055_v53 = vld [vmem:[#allocation2 + $0xd4] sm:$0xf] }
  0x3a   :  { %946 = vmatpush.bf16.msrb.mxu2 %v1824_v38  ;;  %v1668_v38 = vor.u32 %v2091_v18, %v1665_v20  ;;  %v2073_v41 = vld [vmem:[#allocation2 + $0x164] sm:$0xf]  ;;  %v1657_v46 = vld [vmem:[#allocation2 + $0x1e8] sm:$0xf0]  ;;  %v1532_v49 = vor.u32 %v2057_v37, %v1529_v40  ;;  %v2071_v56 = vld [vmem:[#allocation2 + $0x154] sm:$0xf] }
  0x3b   :  { %960 = vmatpush.bf16.msrb.mxu3 %v1888_v42  ;;  %v1593_v42 = vld [vmem:[#allocation2 + $0x168] sm:$0xf0]  ;;  %v2089_v45 = vld [vmem:[#allocation2 + $0x1e4] sm:$0xf]  ;;  %v1585_v57 = vld [vmem:[#allocation2 + $0x158] sm:$0xf0] }
  0x3c   :  { %919 = vmatpush.bf16.msrb.mxu0 %v1688_v48  ;;  %v1468_v48 = vor.u32 %v2041_v35, %v1465_v36  ;;  %v1660_v54 = vor.u32 %v2089_v45, %v1657_v46  ;;  %v2087_v59 = vld [vmem:[#allocation2 + $0x1d4] sm:$0xf]  ;;  %v1649_v60 = vld [vmem:[#allocation2 + $0x1d8] sm:$0xf0]  ;;  %v2037_v0 = vld [vmem:[#allocation2 + $0x44] sm:$0xf] }
  0x3d   :  { %933 = vmatpush.bf16.msrb.mxu1 %v1752_v50  ;;  %v1596_v50 = vor.u32 %v2073_v41, %v1593_v42  ;;  %v1449_v2 = vld [vmem:[#allocation2 + $0x48] sm:$0xf0]  ;;  %v2053_v3 = vld [vmem:[#allocation2 + $0xc4] sm:$0xf]  ;;  %v1652_v4 = vor.u32 %v2087_v59, %v1649_v60  ;;  %v2035_v14 = vld [vmem:[#allocation2 + $0x34] sm:$0xf] }
  0x3e   :  { %947 = vmatpush.bf16.msrb.mxu2 %v1816_v51  ;;  %v2039_v51 = vld [vmem:[#allocation2 + $0x54] sm:$0xf]  ;;  %v1577_v7 = vld [vmem:[#allocation2 + $0x148] sm:$0xf0]  ;;  %v2085_v8 = vld [vmem:[#allocation2 + $0x1c4] sm:$0xf] }
  0x3f   :  { %961 = vmatpush.bf16.msrb.mxu3 %v1880_v55  ;;  %v1521_v55 = vld [vmem:[#allocation2 + $0xd8] sm:$0xf0]  ;;  %v1460_v61 = vor.u32 %v2039_v51, %v1457_v52  ;;  %v1641_v9 = vld [vmem:[#allocation2 + $0x1c8] sm:$0xf0]  ;;  %v2051_v16 = vld [vmem:[#allocation2 + $0xb4] sm:$0xf] }
  0x40   :  { %920 = vmatpush.bf16.msrb.mxu0 %v1680_v63  ;;  %v1524_v62 = vor.u32 %v2055_v53, %v1521_v55  ;;  %v1588_v63 = vor.u32 %v2071_v56, %v1585_v57  ;;  %v1441_v15 = vld [vmem:[#allocation2 + $0x38] sm:$0xf0]  ;;  %v1644_v18 = vor.u32 %v2085_v8, %v1641_v9  ;;  %v2067_v20 = vld [vmem:[#allocation2 + $0x134] sm:$0xf]  ;;  %v2033_v27 = vld [vmem:[#allocation2 + $0x24] sm:$0xf] }
  0x41   :  { %934 = vmatpush.bf16.msrb.mxu1 %v1744_v5  ;;  %v1513_v5 = vld [vmem:[#allocation2 + $0xc8] sm:$0xf0]  ;;  %v1569_v21 = vld [vmem:[#allocation2 + $0x138] sm:$0xf0]  ;;  %v2083_v22 = vld [vmem:[#allocation2 + $0x1b4] sm:$0xf] }
  0x42   :  { %948 = vmatpush.bf16.msrb.mxu2 %v1808_v6  ;;  %v2069_v6 = vld [vmem:[#allocation2 + $0x144] sm:$0xf]  ;;  %v1516_v12 = vor.u32 %v2053_v3, %v1513_v5  ;;  %v1572_v26 = vor.u32 %v2067_v20, %v1569_v21  ;;  %v1497_v31 = vld [vmem:[#allocation2 + $0xa8] sm:$0xf0]  ;;  %v2031_v40 = vld [vmem:[#allocation2 + $0x14] sm:$0xf] }
  0x43   :  { %962 = vmatpush.bf16.msrb.mxu3 %v1872_v11  ;;  %v1452_v11 = vor.u32 %v2037_v0, %v1449_v2  ;;  %v1580_v13 = vor.u32 %v2069_v6, %v1577_v7  ;;  %v2065_v32 = vld [vmem:[#allocation2 + $0x124] sm:$0xf]  ;;  %v1625_v35 = vld [vmem:[#allocation2 + $0x1a8] sm:$0xf0]  ;;  %v1425_v41 = vld [vmem:[#allocation2 + $0x18] sm:$0xf0] }
  0x44   :  { %921 = vmatpush.bf16.msrb.mxu0 %v1672_v19  ;;  %v1505_v19 = vld [vmem:[#allocation2 + $0xb8] sm:$0xf0]  ;;  %v2047_v42 = vld [vmem:[#allocation2 + $0x94] sm:$0xf]  ;;  %v1428_v52 = vor.u32 %v2031_v40, %v1425_v41  ;;  %v2029_v53 = vld [vmem:[#allocation2 + $0x4] sm:$0xf] }
  0x45   :  { %935 = vmatpush.bf16.msrb.mxu1 %v1736_v23  ;;  %v1633_v23 = vld [vmem:[#allocation2 + $0x1b8] sm:$0xf0]  ;;  %v1508_v25 = vor.u32 %v2051_v16, %v1505_v19  ;;  %v2045_v57 = vld [vmem:[#allocation2 + $0x84] sm:$0xf]  ;;  %v1481_v59 = vld [vmem:[#allocation2 + $0x88] sm:$0xf0] }
  0x46   :  { %949 = vmatpush.bf16.msrb.mxu2 %v1800_v24  ;;  %v1444_v24 = vor.u32 %v2035_v14, %v1441_v15  ;;  %v1636_v30 = vor.u32 %v2083_v22, %v1633_v23  ;;  %v1489_v46 = vld [vmem:[#allocation2 + $0x98] sm:$0xf0]  ;;  %v2061_v60 = vld [vmem:[#allocation2 + $0x104] sm:$0xf]  ;;  %v1609_v0 = vld [vmem:[#allocation2 + $0x188] sm:$0xf0]  ;;  %v1484_v9 = vor.u32 %v2045_v57, %v1481_v59 }
  0x47   :  { %963 = vmatpush.bf16.msrb.mxu3 %v1864_v28  ;;  %922 = vmatmul.bf16.vlgmr.msrb.gmra.mxu0 %v2317_v39  ;;  %v1433_v28 = vld [vmem:[#allocation2 + $0x28] sm:$0xf0]  ;;  %v1617_v51 = vld [vmem:[#allocation2 + $0x198] sm:$0xf0]  ;;  %v1492_v55 = vor.u32 %v2047_v42, %v1489_v46  ;;  %v2107_v2 = vld [vmem:[#allocation2 + $0x274] sm:$0xf] }
  0x48   :  { %970 = vmatpush.bf16.msra.mxu0 %v1476_v29  ;;  %936 = vmatmul.bf16.vlgmr.msrb.gmra.mxu1 %v2321_v44  ;;  %v2049_v29 = vld [vmem:[#allocation2 + $0xa4] sm:$0xf]  ;;  %v1436_v36 = vor.u32 %v2033_v27, %v1433_v28  ;;  %v1729_v3 = vld [vmem:[#allocation2 + $0x278] sm:$0xf0]  ;;  %v2139_v7 = vld [vmem:[#allocation2 + $0x374] sm:$0xf] }
  0x49   :  { %984 = vmatpush.bf16.msra.mxu1 %v1540_v33  ;;  %950 = vmatmul.bf16.vlgmr.msrb.gmra.mxu2 %v2319_v43  ;;  %v1561_v33 = vld [vmem:[#allocation2 + $0x128] sm:$0xf0]  ;;  %v1500_v37 = vor.u32 %v2049_v29, %v1497_v31  ;;  %v1793_v6 = vld [vmem:[#allocation2 + $0x2f8] sm:$0xf0]  ;;  %v1732_v15 = vor.u32 %v2107_v2, %v1729_v3  ;;  %v2105_v16 = vld [vmem:[#allocation2 + $0x264] sm:$0xf] }
  0x4a   :  { %998 = vmatpush.bf16.msra.mxu2 %v1604_v34  ;;  %964 = vmatmul.bf16.vlgmr.msrb.gmra.mxu3 %v2323_v47  ;;  %v2081_v34 = vld [vmem:[#allocation2 + $0x1a4] sm:$0xf]  ;;  %v1857_v8 = vld [vmem:[#allocation2 + $0x378] sm:$0xf0]  ;;  %v1721_v20 = vld [vmem:[#allocation2 + $0x268] sm:$0xf0] }
  0x4b   :  { %1012 = vmatpush.bf16.msra.mxu3 %v1668_v38  ;;  %v1564_v38 = vor.u32 %v2065_v32, %v1561_v33  ;;  %v1628_v45 = vor.u32 %v2081_v34, %v1625_v35  ;;  %v1860_v19 = vor.u32 %v2139_v7, %v1857_v8  ;;  %v2121_v21 = vld [vmem:[#allocation2 + $0x2e4] sm:$0xf]  ;;  %v1785_v23 = vld [vmem:[#allocation2 + $0x2e8] sm:$0xf0]  ;;  %v1724_v28 = vor.u32 %v2105_v16, %v1721_v20  ;;  %v2103_v31 = vld [vmem:[#allocation2 + $0x254] sm:$0xf] }
  0x4c   :  { %971 = vmatpush.bf16.msra.mxu0 %v1468_v48  ;;  %v2063_v48 = vld [vmem:[#allocation2 + $0x114] sm:$0xf]  ;;  %v1913_v27 = vld [vmem:[#allocation2 + $0x3e8] sm:$0xf0]  ;;  %v1788_v29 = vor.u32 %v2121_v21, %v1785_v23  ;;  %v1713_v32 = vld [vmem:[#allocation2 + $0x258] sm:$0xf0] }
  0x4d   :  { %985 = vmatpush.bf16.msra.mxu1 %v1532_v49  ;;  %v1553_v49 = vld [vmem:[#allocation2 + $0x118] sm:$0xf0]  ;;  %v2119_v33 = vld [vmem:[#allocation2 + $0x2d4] sm:$0xf]  ;;  %v1716_v41 = vor.u32 %v2103_v31, %v1713_v32  ;;  %v2101_v46 = vld [vmem:[#allocation2 + $0x244] sm:$0xf] }
  0x4e   :  { %999 = vmatpush.bf16.msra.mxu2 %v1596_v50  ;;  %v2079_v50 = vld [vmem:[#allocation2 + $0x194] sm:$0xf]  ;;  %v1556_v56 = vor.u32 %v2063_v48, %v1553_v49  ;;  %v1777_v35 = vld [vmem:[#allocation2 + $0x2d8] sm:$0xf0]  ;;  %v1705_v48 = vld [vmem:[#allocation2 + $0x248] sm:$0xf0] }
  0x4f   :  { %1013 = vmatpush.bf16.msra.mxu3 %v1660_v54  ;;  %v1417_v54 = vld [vmem:[#allocation2 + $0x8] sm:$0xf0]  ;;  %v1905_v40 = vld [vmem:[#allocation2 + $0x3d8] sm:$0xf0]  ;;  %v1780_v42 = vor.u32 %v2119_v33, %v1777_v35  ;;  %v2115_v57 = vld [vmem:[#allocation2 + $0x2b4] sm:$0xf] }
  0x50   :  { %972 = vmatpush.bf16.msra.mxu0 %v1460_v61  ;;  %v1620_v61 = vor.u32 %v2079_v50, %v1617_v51  ;;  %v1420_v5 = vor.u32 %v2029_v53, %v1417_v54  ;;  %v1769_v50 = vld [vmem:[#allocation2 + $0x2c8] sm:$0xf0]  ;;  %v2133_v51 = vld [vmem:[#allocation2 + $0x344] sm:$0xf]  ;;  %v1681_v20 = vld [vmem:[#allocation2 + $0x218] sm:$0xf0] }
  0x51   :  { %986 = vmatpush.bf16.msra.mxu1 %v1524_v62  ;;  %v1545_v62 = vld [vmem:[#allocation2 + $0x108] sm:$0xf0]  ;;  %v2113_v7 = vld [vmem:[#allocation2 + $0x2a4] sm:$0xf]  ;;  %v2111_v21 = vld [vmem:[#allocation2 + $0x294] sm:$0xf] }
  0x52   :  { %1000 = vmatpush.bf16.msra.mxu2 %v1588_v63  ;;  %v2077_v63 = vld [vmem:[#allocation2 + $0x184] sm:$0xf]  ;;  %v1897_v53 = vld [vmem:[#allocation2 + $0x3c8] sm:$0xf0]  ;;  %v1745_v23 = vld [vmem:[#allocation2 + $0x298] sm:$0xf0] }
  0x53   :  { %1014 = vmatpush.bf16.msra.mxu3 %v1652_v4  ;;  %v2123_v4 = vld [vmem:[#allocation2 + $0x2f4] sm:$0xf]  ;;  %v1612_v14 = vor.u32 %v2077_v63, %v1609_v0  ;;  %v1889_v0 = vld [vmem:[#allocation2 + $0x3b8] sm:$0xf0]  ;;  %v2093_v31 = vld [vmem:[#allocation2 + $0x204] sm:$0xf] }
  0x54   :  { %973 = vmatpush.bf16.msra.mxu0 %v1452_v11  ;;  %v1548_v11 = vor.u32 %v2061_v60, %v1545_v62  ;;  %v1761_v60 = vld [vmem:[#allocation2 + $0x2b8] sm:$0xf0]  ;;  %v2147_v63 = vld [vmem:[#allocation2 + $0x3b4] sm:$0xf]  ;;  %v1673_v32 = vld [vmem:[#allocation2 + $0x208] sm:$0xf0] }
  0x55   :  { %987 = vmatpush.bf16.msra.mxu1 %v1516_v12  ;;  %v2155_v12 = vld [vmem:[#allocation2 + $0x3f4] sm:$0xf]  ;;  %v1825_v62 = vld [vmem:[#allocation2 + $0x338] sm:$0xf0]  ;;  %v1764_v3 = vor.u32 %v2115_v57, %v1761_v60  ;;  %v1892_v8 = vor.u32 %v2147_v63, %v1889_v0  ;;  %v2109_v33 = vld [vmem:[#allocation2 + $0x284] sm:$0xf] }
  0x56   :  { %1001 = vmatpush.bf16.msra.mxu2 %v1580_v13  ;;  %v1921_v13 = vld [vmem:[#allocation2 + $0x3f8] sm:$0xf0]  ;;  %v1737_v35 = vld [vmem:[#allocation2 + $0x288] sm:$0xf0]  ;;  %v2170_v60 = vld [vmem:[%s2445_s3 + $0x68] sm:$0xff] }
  0x57   :  { %1015 = vmatpush.bf16.msra.mxu3 %v1644_v18  ;;  %v1796_v18 = vor.u32 %v2123_v4, %v1793_v6  ;;  %v1924_v22 = vor.u32 %v2155_v12, %v1921_v13  ;;  %v1689_v6 = vld [vmem:[#allocation2 + $0x228] sm:$0xf0]  ;;  %v2145_v13 = vld [vmem:[#allocation2 + $0x3a4] sm:$0xf]  ;;  %v2169_v63 = vld [vmem:[%s2445_s3 + $0x60] sm:$0xff] }
  0x58   :  { %974 = vmatpush.bf16.msra.mxu0 %v1444_v24  ;;  %v2137_v24 = vld [vmem:[#allocation2 + $0x364] sm:$0xf]  ;;  %v1817_v12 = vld [vmem:[#allocation2 + $0x328] sm:$0xf0] }
  0x59   :  { %988 = vmatpush.bf16.msra.mxu1 %v1508_v25  ;;  %v1849_v25 = vld [vmem:[#allocation2 + $0x368] sm:$0xf0] }
  0x5a   :  { %1002 = vmatpush.bf16.msra.mxu2 %v1572_v26  ;;  %v2153_v26 = vld [vmem:[#allocation2 + $0x3e4] sm:$0xf] }
  0x5b   :  { %1016 = vmatpush.bf16.msra.mxu3 %v1636_v30  ;;  %v1852_v30 = vor.u32 %v2137_v24, %v1849_v25  ;;  %v1916_v34 = vor.u32 %v2153_v26, %v1913_v27  ;;  %v2127_v24 = vld [vmem:[#allocation2 + $0x314] sm:$0xf]  ;;  %v1809_v25 = vld [vmem:[#allocation2 + $0x318] sm:$0xf0] }
  0x5c   :  { %975 = vmatpush.bf16.msra.mxu0 %v1436_v36  ;;  %v2135_v36 = vld [vmem:[#allocation2 + $0x354] sm:$0xf]  ;;  %v1873_v27 = vld [vmem:[#allocation2 + $0x398] sm:$0xf0] }
  0x5d   :  { %989 = vmatpush.bf16.msra.mxu1 %v1500_v37  ;;  %v1841_v37 = vld [vmem:[#allocation2 + $0x358] sm:$0xf0]  ;;  %v2143_v26 = vld [vmem:[#allocation2 + $0x394] sm:$0xf] }
  0x5e   :  { %1003 = vmatpush.bf16.msra.mxu2 %v1564_v38  ;;  %v2151_v38 = vld [vmem:[#allocation2 + $0x3d4] sm:$0xf] }
  0x5f   :  { %1017 = vmatpush.bf16.msra.mxu3 %v1628_v45  ;;  %v1844_v45 = vor.u32 %v2135_v36, %v1841_v37  ;;  %v1908_v49 = vor.u32 %v2151_v38, %v1905_v40  ;;  %v2125_v36 = vld [vmem:[#allocation2 + $0x304] sm:$0xf]  ;;  %v1801_v37 = vld [vmem:[#allocation2 + $0x308] sm:$0xf0] }
  0x60   :  { %976 = vmatpush.bf16.msra.mxu0 %v1428_v52  ;;  %v2149_v52 = vld [vmem:[#allocation2 + $0x3c4] sm:$0xf]  ;;  %v1865_v40 = vld [vmem:[#allocation2 + $0x388] sm:$0xf0] }
  0x61   :  { %990 = vmatpush.bf16.msra.mxu1 %v1492_v55  ;;  %v2099_v55 = vld [vmem:[#allocation2 + $0x234] sm:$0xf]  ;;  %v1900_v59 = vor.u32 %v2149_v52, %v1897_v53  ;;  %v2141_v38 = vld [vmem:[#allocation2 + $0x384] sm:$0xf] }
  0x62   :  { %1004 = vmatpush.bf16.msra.mxu2 %v1556_v56  ;;  %v1697_v56 = vld [vmem:[#allocation2 + $0x238] sm:$0xf0]  ;;  %v2172_v52 = vld [vmem:[%s2445_s3 + $0x78] sm:$0xff] }
  0x63   :  { %1018 = vmatpush.bf16.msra.mxu3 %v1620_v61  ;;  %v2131_v61 = vld [vmem:[#allocation2 + $0x334] sm:$0xf]  ;;  %v1700_v2 = vor.u32 %v2099_v55, %v1697_v56 }
  0x64   :  { %977 = vmatpush.bf16.msra.mxu0 %v1420_v5  ;;  %v1828_v4 = vor.u32 %v2131_v61, %v1825_v62  ;;  %v2097_v5 = vld [vmem:[#allocation2 + $0x224] sm:$0xf]  ;;  %v2161_v62 = vld [vmem:[%s2445_s3 + $0x20] sm:$0xff] }
  0x65   :  { %991 = vmatpush.bf16.msra.mxu1 %v1484_v9  ;;  %v1753_v9 = vld [vmem:[#allocation2 + $0x2a8] sm:$0xf0] }
  0x66   :  { %1005 = vmatpush.bf16.msra.mxu2 %v1548_v11  ;;  %v2129_v11 = vld [vmem:[#allocation2 + $0x324] sm:$0xf]  ;;  %v1756_v16 = vor.u32 %v2113_v7, %v1753_v9  ;;  %v2159_v7 = vld [vmem:[%s2445_s3 + $0x10] sm:$0xff] }
  0x67   :  { %1019 = vmatpush.bf16.msra.mxu3 %v1612_v14  ;;  %978 = vmatmul.bf16.vlgmr.msra.gmra.mxu0 %v2266_v58  ;;  %v1708_v58 = vor.u32 %v2101_v46, %v1705_v48  ;;  %v1881_v14 = vld [vmem:[#allocation2 + $0x3a8] sm:$0xf0]  ;;  %v1868_v46 = vor.u32 %v2141_v38, %v1865_v40  ;;  %v2178_v38 = vld [vmem:[%s2447_s5 + $0x28] sm:$0xff] }
  0x68   :  { %1026 = vmatpush.bf16.msrb.mxu0 %v1732_v15  ;;  %992 = vmatmul.bf16.vlgmr.msra.gmra.mxu1 %v2284_v10  ;;  %v1692_v15 = vor.u32 %v2097_v5, %v1689_v6  ;;  %v2168_v5 = vld [vmem:[%s2445_s3 + $0x58] sm:$0xff] }
  0x69   :  { %1040 = vmatpush.bf16.msrb.mxu1 %v1796_v18  ;;  %1006 = vmatmul.bf16.vlgmr.msra.gmra.mxu2 %v2271_v1  ;;  %v2117_v1 = vld [vmem:[#allocation2 + $0x2c4] sm:$0xf]  ;;  %v1820_v18 = vor.u32 %v2129_v11, %v1817_v12 }
  0x6a   :  { %1054 = vmatpush.bf16.msrb.mxu2 %v1860_v19  ;;  %1020 = vmatmul.bf16.vlgmr.msra.gmra.mxu3 %v2289_v17  ;;  %v1833_v17 = vld [vmem:[#allocation2 + $0x348] sm:$0xf0]  ;;  %v1772_v54 = vor.u32 %v2117_v1, %v1769_v50  ;;  %v2095_v19 = vld [vmem:[#allocation2 + $0x214] sm:$0xf] }
  0x6b   :  { %1068 = vmatpush.bf16.msrb.mxu3 %v1924_v22  ;;  %v1836_v10 = vor.u32 %v2133_v51, %v1833_v17  ;;  %v1884_v22 = vor.u32 %v2145_v13, %v1881_v14  ;;  %v2164_v17 = vld [vmem:[%s2445_s3 + $0x38] sm:$0xff]  ;;  %v2158_v13 = vld [vmem:[%s2445_s3 + $0x8] sm:$0xff] }
  0x6c   :  { %1027 = vmatpush.bf16.msrb.mxu0 %v1724_v28  ;;  %v1684_v28 = vor.u32 %v2095_v19, %v1681_v20  ;;  %v2166_v14 = vld [vmem:[%s2445_s3 + $0x48] sm:$0xff]  ;;  %v2157_v19 = vld [vmem:[%s2445_s3] sm:$0xff] }
  0x6d   :  { %1041 = vmatpush.bf16.msrb.mxu1 %v1788_v29  ;;  %v1748_v29 = vor.u32 %v2111_v21, %v1745_v23  ;;  %v2165_v20 = vld [vmem:[%s2445_s3 + $0x40] sm:$0xff] }
  0x6e   :  { %1055 = vmatpush.bf16.msrb.mxu2 %v1852_v30  ;;  %v1812_v30 = vor.u32 %v2127_v24, %v1809_v25  ;;  %v2180_v25 = vld [vmem:[%s2447_s5 + $0x38] sm:$0xff] }
  0x6f   :  { %1069 = vmatpush.bf16.msrb.mxu3 %v1916_v34  ;;  %v1876_v34 = vor.u32 %v2143_v26, %v1873_v27 }
  0x70   :  { %1028 = vmatpush.bf16.msrb.mxu0 %v1716_v41  ;;  %v1676_v41 = vor.u32 %v2093_v31, %v1673_v32  ;;  %v2179_v32 = vld [vmem:[%s2447_s5 + $0x30] sm:$0xff] }
  0x71   :  { %1042 = vmatpush.bf16.msrb.mxu1 %v1780_v42  ;;  %v1740_v42 = vor.u32 %v2109_v33, %v1737_v35 }
  0x72   :  { %1056 = vmatpush.bf16.msrb.mxu2 %v1844_v45  ;;  %v1804_v45 = vor.u32 %v2125_v36, %v1801_v37 }
  0x73   :  { %1070 = vmatpush.bf16.msrb.mxu3 %v1908_v49 }
  0x74   :  { %1029 = vmatpush.bf16.msrb.mxu0 %v1708_v58  ;;  %v2163_v58 = vld [vmem:[%s2445_s3 + $0x30] sm:$0xff] }
  0x75   :  { %1043 = vmatpush.bf16.msrb.mxu1 %v1772_v54  ;;  %v2171_v54 = vld [vmem:[%s2445_s3 + $0x70] sm:$0xff] }
  0x76   :  { %1057 = vmatpush.bf16.msrb.mxu2 %v1836_v10  ;;  %v1084_v10 = vld [vmem:[%s2444_s2] sm:$0x3] }
  0x77   :  { %1071 = vmatpush.bf16.msrb.mxu3 %v1900_v59  ;;  %1086 = vst [vmem:[#allocation1] ss:$9 sm:$0xff] %v1084_v10  ;;  %v2162_v59 = vld [vmem:[%s2445_s3 + $0x28] sm:$0xff] }
  0x78   :  { %1030 = vmatpush.bf16.msrb.mxu0 %v1700_v2 }
  0x79   :  { %1044 = vmatpush.bf16.msrb.mxu1 %v1764_v3 }
  0x7a   :  { %1058 = vmatpush.bf16.msrb.mxu2 %v1828_v4  ;;  %v2160_v4 = vld [vmem:[%s2445_s3 + $0x18] sm:$0xff] }
  0x7b   :  { %1072 = vmatpush.bf16.msrb.mxu3 %v1892_v8  ;;  %v2167_v8 = vld [vmem:[%s2445_s3 + $0x50] sm:$0xff] }
  0x7c   :  { %1031 = vmatpush.bf16.msrb.mxu0 %v1692_v15 }
  0x7d   :  { %1045 = vmatpush.bf16.msrb.mxu1 %v1756_v16 }
  0x7e   :  { %1059 = vmatpush.bf16.msrb.mxu2 %v1820_v18 }
  0x7f   :  { %1073 = vmatpush.bf16.msrb.mxu3 %v1884_v22 }
  0x80   :  { %1032 = vmatpush.bf16.msrb.mxu0 %v1684_v28 }
  0x81   :  { %1046 = vmatpush.bf16.msrb.mxu1 %v1748_v29 }
  0x82   :  { %1060 = vmatpush.bf16.msrb.mxu2 %v1812_v30 }
  0x83   :  { %1074 = vmatpush.bf16.msrb.mxu3 %v1876_v34 }
  0x84   :  { %1033 = vmatpush.bf16.msrb.mxu0 %v1676_v41 }
  0x85   :  { %1047 = vmatpush.bf16.msrb.mxu1 %v1740_v42  ;;  %v1087_v42 = vld [vmem:[#allocation1] sm:$0xff] }
  0x86   :  { %1061 = vmatpush.bf16.msrb.mxu2 %v1804_v45 }
  0x87   :  { %1075 = vmatpush.bf16.msrb.mxu3 %v1868_v46  ;;  %1034 = vmatmul.bf16.vlgmr.msrb.gmra.mxu0 %v2317_v39 }
  0x88   :  { %1048 = vmatmul.bf16.vlgmr.msrb.gmra.mxu1 %v2321_v44  ;;  %1245 = vmatpush.bf16.msra.mxu0 %v2164_v17 }
  0x89   :  { %1062 = vmatmul.bf16.vlgmr.msrb.gmra.mxu2 %v2319_v43  ;;  %1259 = vmatpush.bf16.msra.mxu1 %v2172_v52  ;;  %v1089_v52 = vpack.i.b16 %v1087_v42, %v1087_v42 }
  0x8a   :  { %1076 = vmatmul.bf16.vlgmr.msrb.gmra.mxu3 %v2323_v47  ;;  %1360 = vmatpush.bf16.msra.mxu2 %v2180_v25  ;;  %v1275_v25 = vld [vmem:[%s2446_s4] sm:$0x1] }
  0x8c   :  { %1246 = vmatpush.bf16.msra.mxu0 %v2163_v58 }
  0x8d   :  { %1260 = vmatpush.bf16.msra.mxu1 %v2171_v54  ;;  %v1091_v54 = vperm.slane %v1089_v52, 0 }
  0x8e   :  { %1361 = vmatpush.bf16.msra.mxu2 %v2179_v32 }
  0x90   :  { %1247 = vmatpush.bf16.msra.mxu0 %v2162_v59 }
  0x91   :  { %1261 = vmatpush.bf16.msra.mxu1 %v2170_v60 }
  0x92   :  { %1362 = vmatpush.bf16.msra.mxu2 %v2178_v38 }
  0x94   :  { %1248 = vmatpush.bf16.msra.mxu0 %v2161_v62 }
  0x95   :  { %1262 = vmatpush.bf16.msra.mxu1 %v2169_v63 }
  0x98   :  { %1249 = vmatpush.bf16.msra.mxu0 %v2160_v4 }
  0x99   :  { %1263 = vmatpush.bf16.msra.mxu1 %v2168_v5 }
  0x9c   :  { %1250 = vmatpush.bf16.msra.mxu0 %v2159_v7 }
  0x9d   :  { %1264 = vmatpush.bf16.msra.mxu1 %v2167_v8 }
  0xa0   :  { %1251 = vmatpush.bf16.msra.mxu0 %v2158_v13 }
  0xa1   :  { %1265 = vmatpush.bf16.msra.mxu1 %v2166_v14 }
  0xa4   :  { %v867_v48 = vpop.f32.mrf.mxu0  ;;  %1252 = vmatpush.bf16.msra.mxu0 %v2157_v19 }
  0xa5   :  { %v881_v1 = vpop.f32.mrf.mxu1  ;;  %1266 = vmatpush.bf16.msra.mxu1 %v2165_v20 }
  0xa6   :  { %v882_v9 = vadd.f32 %v881_v1, %v867_v48  ;;  %v1088_v48 = vld [vmem:[#allocation1 + $0x9] sm:$0xff] }
  0xac   :  { %v895_v49 = vpop.f32.mrf.mxu2  ;;  %v869_v51 = vpop.f32.mrf.mxu0 }
  0xad   :  { %v909_v50 = vpop.f32.mrf.mxu3  ;;  %v883_v39 = vpop.f32.mrf.mxu1  ;;  %v896_v15 = vadd.f32 %v895_v49, %v882_v9 }
  0xae   :  { %v884_v24 = vadd.f32 %v883_v39, %v869_v51 }
  0xaf   :  { %v910_v22 = vadd.f32 %v909_v50, %v896_v15 }
  0xb4   :  { %v897_v44 = vpop.f32.mrf.mxu2 }
  0xb5   :  { %v2343_v43 = vpop.f32.mrf.mxu3  ;;  %v898_v33 = vadd.f32 %v897_v44, %v884_v24  ;;  %v1092_v44 = vpack.i.b16 %v1088_v48, %v1088_v48  ;;  %v2173_v24 = vld [vmem:[%s2447_s5] sm:$0xff] }
  0xb6   :  { %v2184_v48 = vld [vmem:[%s2448_s6] ss:$0 sm:$0xff] }
  0xb7   :  { %v912_v40 = vadd.f32 %v2343_v43, %v898_v33  ;;  %v1094_v59 = vperm.slane %v1092_v44, 0 }
  0xb9   :  { %v1100_v7 = vunpack.c.l.bf16 %v1094_v59 }
  0xc4   :  { %v923_v47 = vpop.f32.mrf.mxu0 }
  0xc5   :  { %v937_v53 = vpop.f32.mrf.mxu1  ;;  %v924_v27 = vadd.f32 %v923_v47, %v910_v22  ;;  %v2175_v22 = vld [vmem:[%s2447_s5 + $0x10] sm:$0xff] }
  0xc7   :  { %v938_v36 = vadd.f32 %v937_v53, %v924_v27 }
  0xcc   :  { %v2354_v55 = vpop.f32.mrf.mxu2  ;;  %v925_v57 = vpop.f32.mrf.mxu0 }
  0xcd   :  { %v2356_v56 = vpop.f32.mrf.mxu3  ;;  %v2364_v61 = vpop.f32.mrf.mxu1  ;;  %v926_v45 = vadd.f32 %v925_v57, %v912_v40  ;;  %v952_v1 = vadd.f32 %v2354_v55, %v938_v36 }
  0xcf   :  { %v940_v53 = vadd.f32 %v2364_v61, %v926_v45  ;;  %v966_v43 = vadd.f32 %v2356_v56, %v952_v1 }
  0xd4   :  { %v2372_v0 = vpop.f32.mrf.mxu2 }
  0xd5   :  { %v2374_v2 = vpop.f32.mrf.mxu3  ;;  %v954_v58 = vadd.f32 %v2372_v0, %v940_v53 }
  0xd7   :  { %v968_v63 = vadd.f32 %v2374_v2, %v954_v58  ;;  %v2177_v2 = vld [vmem:[%s2447_s5 + $0x20] sm:$0xff] }
  0xd8   :  { %1363 = vmatpush.bf16.msra.mxu2 %v2177_v2 }
  0xe4   :  { %v979_v3 = vpop.f32.mrf.mxu0 }
  0xe5   :  { %v993_v6 = vpop.f32.mrf.mxu1 }
  0xe6   :  { %v994_v16 = vadd.f32 %v993_v6, %v979_v3  ;;  %v1099_v3 = vunpack.c.l.bf16 %v1091_v54 }
  0xec   :  { %v1007_v11 = vpop.f32.mrf.mxu2  ;;  %v981_v18 = vpop.f32.mrf.mxu0 }
  0xed   :  { %v1021_v12 = vpop.f32.mrf.mxu3  ;;  %v995_v21 = vpop.f32.mrf.mxu1  ;;  %v1008_v23 = vadd.f32 %v1007_v11, %v994_v16 }
  0xee   :  { %v996_v29 = vadd.f32 %v995_v21, %v981_v18  ;;  %v2176_v21 = vld [vmem:[%s2447_s5 + $0x18] sm:$0xff] }
  0xef   :  { %v1022_v28 = vadd.f32 %v1021_v12, %v1008_v23  ;;  %1364 = vmatpush.bf16.msra.mxu2 %v2176_v21  ;;  %v2174_v23 = vld [vmem:[%s2447_s5 + $0x8] sm:$0xff] }
  0xf3   :  { %1365 = vmatpush.bf16.msra.mxu2 %v2175_v22 }
  0xf4   :  { %v1009_v26 = vpop.f32.mrf.mxu2 }
  0xf5   :  { %v1023_v30 = vpop.f32.mrf.mxu3  ;;  %v1010_v37 = vadd.f32 %v1009_v26, %v996_v29  ;;  %v1277_v29 = vpack.i.b16 %v1275_v25, %v1275_v25 }
  0xf7   :  { %v1024_v49 = vadd.f32 %v1023_v30, %v1010_v37  ;;  %1366 = vmatpush.bf16.msra.mxu2 %v2174_v23 }
  0xfb   :  { %1367 = vmatpush.bf16.msra.mxu2 %v2173_v24 }
 0x104   :  { %v1035_v31 = vpop.f32.mrf.mxu0 }
 0x105   :  { %v1036_v34 = vadd.f32 %v1035_v31, %v1022_v28  ;;  %v1049_v35 = vpop.f32.mrf.mxu1  ;;  %v1279_v31 = vperm.slane %v1277_v29, 0 }
 0x107   :  { %v1050_v41 = vadd.f32 %v1049_v35, %v1036_v34  ;;  %v1282_v35 = vunpack.c.l.bf16 %v1279_v31 }
 0x10c   :  { %v1063_v46 = vpop.f32.mrf.mxu2  ;;  %v1037_v17 = vpop.f32.mrf.mxu0 }
 0x10d   :  { %v1064_v50 = vadd.f32 %v1063_v46, %v1050_v41  ;;  %v1077_v51 = vpop.f32.mrf.mxu3  ;;  %v1038_v47 = vadd.f32 %v1037_v17, %v1024_v49  ;;  %v1051_v10 = vpop.f32.mrf.mxu1 }
 0x10f   :  { %v1078_v39 = vadd.f32 %v1077_v51, %v1064_v50  ;;  %v1052_v55 = vadd.f32 %v1051_v10, %v1038_v47 }
 0x111   :  { %v1082_v57 = vpack.c.bf16 %v1078_v39, %v966_v43 }
 0x113   :  { %v1095_v5 = vunpack.c.l.bf16 %v1082_v57  ;;  %v1096_v6 = vunpack.c.h.bf16 %v1082_v57 }
 0x114   :  { %v1065_v60 = vpop.f32.mrf.mxu2 }
 0x115   :  { %v1066_v62 = vadd.f32 %v1065_v60, %v1052_v55  ;;  %v1079_v4 = vpop.f32.mrf.mxu3  ;;  %v1101_v9 = vadd.f32 %v1099_v3, %v1095_v5  ;;  %v1102_v56 = vadd.f32 %v1100_v7, %v1096_v6 }
 0x117   :  { %v1080_v8 = vadd.f32 %v1079_v4, %v1066_v62  ;;  %v1111_v14 = vmax.f32 %v1101_v9, 0.0  ;;  %v1112_v15 = vmax.f32 %v1102_v56, 0.0 }
 0x119   :  { %v1083_v61 = vpack.c.bf16 %v1080_v8, %v968_v63 }
 0x11b   :  { %v1097_v11 = vunpack.c.l.bf16 %v1083_v61  ;;  %v1098_v0 = vunpack.c.h.bf16 %v1083_v61 }
 0x11d   :  { %v1103_v12 = vadd.f32 %v1099_v3, %v1097_v11  ;;  %v1104_v13 = vadd.f32 %v1100_v7, %v1098_v0 }
 0x11f   :  { %v1113_v16 = vmax.f32 %v1103_v12, 0.0  ;;  %v1114_v18 = vmax.f32 %v1104_v13, 0.0 }
 0x121   :  { %v1115_v19 = vpack.c.bf16 %v1113_v16, %v1111_v14  ;;  %v1116_v20 = vpack.c.bf16 %v1114_v18, %v1112_v15 }
 0x123   :  { %1253 = vmatmul.bf16.vlgmr.msra.gmra.mxu0 %v1115_v19  ;;  %1267 = vmatmul.bf16.vlgmr.msra.gmra.mxu1 %v1116_v20 }
 0x1a0   :  { %v1254_v26 = vpop.f32.mrf.mxu0  ;;  %v1268_v27 = vpop.f32.mrf.mxu1 }
 0x1a1   :  { %v1269_v28 = vadd.f32 %v1268_v27, %v1254_v26 }
 0x1a3   :  { %v1273_v30 = vpack.c.bf16 %v1269_v28, %v1269_v28 }
 0x1a5   :  { %v1280_v34 = vunpack.c.l.bf16 %v1273_v30 }
 0x1a7   :  { %v1283_v38 = vadd.f32 %v1282_v35, %v1280_v34 }
 0x1a8   :  { %v1256_v32 = vpop.f32.mrf.mxu0  ;;  %v1270_v33 = vpop.f32.mrf.mxu1 }
 0x1a9   :  { %v1271_v36 = vadd.f32 %v1270_v33, %v1256_v32  ;;  %v1289_v42 = vmax.f32 %v1283_v38, 0.0 }
 0x1ab   :  { %v1274_v37 = vpack.c.bf16 %v1271_v36, %v1271_v36 }
 0x1ad   :  { %v1281_v40 = vunpack.c.l.bf16 %v1274_v37 }
 0x1af   :  { %v1284_v41 = vadd.f32 %v1282_v35, %v1281_v40 }
 0x1b1   :  { %v1290_v45 = vmax.f32 %v1284_v41, 0.0 }
 0x1b3   :  { %v1291_v46 = vpack.c.bf16 %v1290_v45, %v1289_v42 }
 0x1b5   :  { %1368 = vmatmul.bf16.vlgmr.msra.gmra.mxu2 %v1291_v46 }
 0x238   :  { %v1369_v1 = vpop.f32.mrf.mxu2 }
 0x239   :  { %v1370_v49 = vadd.f32 %v2184_v48, %v1369_v1 }
 0x23b   :  { %1374 = vst [vmem:[%s2449_s7] sm:$0xff] %v1370_v49 }
 0x240   :  { %v1371_v50 = vpop.f32.mrf.mxu2 }
 0x241   :  { %v1372_v51 = vadd.f32 %v2184_v48, %v1371_v50 }
 0x243   :  { %1375 = vst [vmem:[%s2449_s7 + $0x8] sm:$0xff] %v1372_v51 }
 0x244   :  { %1380 = vsyncpa [#allocation3], 1 }

</bundles_post_ra>
